<compile_context>
chip_gen: v5e
topology: v5e:2x2
jax: 0.10.0
libtpu: 0.0.40
codegen_flags: <defaults>
</compile_context>

<pallas_src>
import functools

import jax
import jax.numpy as jnp
import numpy as np
from jax.experimental import pallas as pl
from jax.experimental.pallas import tpu as pltpu


# --------------------------------------------------------------------------------------
# Kernel
# --------------------------------------------------------------------------------------
def _combine_kernel(lo_ref, hi_ref, w1_ref, w2a_ref, w2b_ref, b1_ref, b2_ref, up_ref,
                    o_ref, *, th_lo, w_lo, tw):
    """Fused upsample + conv/BN/relu + concat + conv/BN for one (batch, row-block) tile.

    lo_ref : (1, nf,  th_lo * w_lo)        low-res input rows (flattened spatial)
    hi_ref : (1, nfh, 2*th_lo * 2*w_lo)    matching high-res skip rows
    w1     : (nfh, nf)   w2a, w2b: (nf, nfh)   b1: (nfh, 1)   b2: (nf, 1)
    up     : (tw, 2*tw)  0/1 column-duplication matrix
    o_ref  : (1, nf,  2*th_lo * 2*w_lo)
    """
    w_hi = 2 * w_lo

    # Stage 1 + low-res half of stage 2 as big lane-dense 2-D matmuls (f32 accumulation).
    u = jnp.dot(w1_ref[...], lo_ref[0], preferred_element_type=jnp.float32) + b1_ref[...]
    u = jnp.maximum(u, 0.0).astype(lo_ref.dtype)                       # (nfh, th_lo*w_lo)
    z = jnp.dot(w2a_ref[...], u, preferred_element_type=jnp.float32)   # (nf,  th_lo*w_lo)
    b2 = b2_ref[...]                                                   # (nf, 1) f32

    # Upsample z x2 in H and W and add the skip contribution, chunk by chunk.
    for h in range(th_lo):                 # static unroll over low-res rows
        for c in range(w_lo // tw):        # static unroll over column chunks
            lo_off = h * w_lo + c * tw
            # column (lane) duplication via the MXU: (nf, tw) @ (tw, 2*tw)
            z2 = jnp.dot(z[:, lo_off:lo_off + tw], up_ref[...],
                         preferred_element_type=jnp.float32)           # (nf, 2*tw)
            for p in range(2):             # row duplication: output rows 2h and 2h+1
                hi_off = (2 * h + p) * w_hi + 2 * c * tw
                y = jnp.dot(w2b_ref[...], hi_ref[0, :, pl.ds(hi_off, 2 * tw)],
                            preferred_element_type=jnp.float32)        # (nf, 2*tw)
                o_ref[0, :, pl.ds(hi_off, 2 * tw)] = (z2 + y + b2).astype(o_ref.dtype)


# --------------------------------------------------------------------------------------
# Tiling / VMEM heuristics
# --------------------------------------------------------------------------------------
def _vmem_capacity_bytes():
    try:
        cap = getattr(pltpu.get_tpu_info(), "vmem_capacity_bytes", None)
        if cap:
            return int(cap)
    except Exception:
        pass
    return 64 * 1024 * 1024   # conservative default: v7x per-TensorCore VMEM


def _pick_interleave_chunk(w_lo):
    """Column-chunk width for the in-kernel W-duplication matrix (must divide w_lo)."""
    if w_lo <= 256:
        return w_lo
    for d in range(256, 15, -1):
        if w_lo % d == 0:
            return d
    return w_lo   # ragged width: one (w_lo, 2*w_lo) matrix per row


def _upsample_matrix(tw):
    u = np.zeros((tw, 2 * tw), np.float32)
    idx = np.arange(tw)
    u[idx, 2 * idx] = 1.0
    u[idx, 2 * idx + 1] = 1.0
    return jnp.asarray(u)


def _pick_row_tile(n, h_lo, w_lo, nf, itemsize, tw, budget):
    """Low-res rows per grid step (divides h_lo) + estimated VMEM bytes for that tile."""
    # double-buffered lo/hi/out blocks + f32 u/z intermediates, per low-res row
    per_row = nf * w_lo * (14 * itemsize + 6)
    fixed = 4 * (2 * nf * nf * itemsize) + 2 * (tw * 2 * tw * 4)   # weights + up-matrix
    avail = max(budget - fixed, per_row)

    divisors = [d for d in range(1, h_lo + 1) if h_lo % d == 0]
    # (8,128) rule on the flattened lane dim: multiple of 128 lanes, or the full dim.
    valid = [d for d in divisors if (d * w_lo) % 128 == 0 or d == h_lo]
    fits = [d for d in valid if d * per_row <= avail and d * (w_lo // tw) <= 64]
    if not fits:
        best = min(valid)                  # smallest legal tile; may exceed the soft budget
    else:
        enough = [d for d in fits if n * (h_lo // d) >= 8]   # feed both v7x TensorCores
        best = max(enough) if enough else min(fits)
    return best, best * per_row + fixed


# --------------------------------------------------------------------------------------
# Wrapper
# --------------------------------------------------------------------------------------
def _fold_bn(w, b, gamma, beta, mean, var, eps=1e-5):
    """Fold conv bias + inference BatchNorm into (W^T scaled, bias) for y = W_t @ x + b_f."""
    s = gamma * jax.lax.rsqrt(var + eps)          # (Cout,)
    w_t = w.T * s[:, None]                        # (Cout, Cin)
    b_f = (s * (b - mean) + beta)[:, None]        # (Cout, 1)
    return w_t, b_f


@jax.jit
def combine_layers_forward(layer_lo, layer_hi, params):
    """layer_lo: (N, nf, H, W), layer_hi: (N, nf//2, 2H, 2W)  ->  (N, nf, 2H, 2W)."""
    n, nf, h_lo, w_lo = layer_lo.shape
    assert nf % 2 == 0
    nfh = nf // 2
    h_hi, w_hi = 2 * h_lo, 2 * w_lo
    assert layer_hi.shape == (n, nfh, h_hi, w_hi)

    cdt = layer_lo.dtype   # MXU feed dtype (bf16 stays bf16); accumulation is f32

    # ---- fold conv bias + BN into the 1x1 conv weights; split W2 over the concat ----
    w1_t, b1_f = _fold_bn(params["w1"], params["b1"], params["bn1_gamma"],
                          params["bn1_beta"], params["bn1_mean"], params["bn1_var"])
    w2_t, b2_f = _fold_bn(params["w2"], params["b2"], params["bn2_gamma"],
                          params["bn2_beta"], params["bn2_mean"], params["bn2_var"])
    w1_t = w1_t.astype(cdt)
    w2a_t = w2_t[:, :nfh].astype(cdt)     # acts on the upsampled branch
    w2b_t = w2_t[:, nfh:].astype(cdt)     # acts on the skip branch
    b1_f = b1_f.astype(jnp.float32)
    b2_f = b2_f.astype(jnp.float32)

    # ---- tiling derived from the chip's VMEM capacity ----
    itemsize = layer_lo.dtype.itemsize
    cap = _vmem_capacity_bytes()
    tw = _pick_interleave_chunk(w_lo)
    th_lo, need = _pick_row_tile(n, h_lo, w_lo, nf, itemsize, tw,
                                 budget=int(cap * 0.45))
    ts = th_lo * w_lo
    vmem_limit = int(min(0.9 * cap, max(32 * 1024 * 1024, 1.5 * need)))

    up_mat = _upsample_matrix(tw)

    lo = layer_lo.reshape(n, nf, h_lo * w_lo)      # contiguous reshapes: free
    hi = layer_hi.reshape(n, nfh, h_hi * w_hi)

    kernel = functools.partial(_combine_kernel, th_lo=th_lo, w_lo=w_lo, tw=tw)
    out = pl.pallas_call(
        kernel,
        out_shape=jax.ShapeDtypeStruct((n, nf, h_hi * w_hi), cdt),
        grid=(n, h_lo // th_lo),
        in_specs=[
            pl.BlockSpec((1, nf, ts), lambda b, j: (b, 0, j)),
            pl.BlockSpec((1, nfh, 4 * ts), lambda b, j: (b, 0, j)),
            pl.BlockSpec((nfh, nf), lambda b, j: (0, 0)),
            pl.BlockSpec((nf, nfh), lambda b, j: (0, 0)),
            pl.BlockSpec((nf, nfh), lambda b, j: (0, 0)),
            pl.BlockSpec((nfh, 1), lambda b, j: (0, 0)),
            pl.BlockSpec((nf, 1), lambda b, j: (0, 0)),
            pl.BlockSpec((tw, 2 * tw), lambda b, j: (0, 0)),
        ],
        out_specs=pl.BlockSpec((1, nf, 4 * ts), lambda b, j: (b, 0, j)),
        compiler_params=pltpu.CompilerParams(
            dimension_semantics=("parallel", "parallel"),
            vmem_limit_bytes=vmem_limit,
        ),
    )(lo, hi, w1_t, w2a_t, w2b_t, b1_f, b2_f, up_mat)

    return out.reshape(n, nf, h_hi, w_hi)          # contiguous reshape: free


# --------------------------------------------------------------------------------------
# Pure-JAX reference (matches the PyTorch module, inference-mode BN)
# --------------------------------------------------------------------------------------
def _reference_forward(layer_lo, layer_hi, params, eps=1e-5):
    lo_up = jnp.repeat(jnp.repeat(layer_lo, 2, axis=2), 2, axis=3)
    up = jnp.einsum("nchw,co->nohw", lo_up, params["w1"]) + params["b1"][None, :, None, None]
    up = ((up - params["bn1_mean"][None, :, None, None])
          / jnp.sqrt(params["bn1_var"] + eps)[None, :, None, None]
          * params["bn1_gamma"][None, :, None, None]
          + params["bn1_beta"][None, :, None, None])
    up = jax.nn.relu(up)
    x = jnp.concatenate([up, layer_hi], axis=1)
    x = jnp.einsum("nchw,co->nohw", x, params["w2"]) + params["b2"][None, :, None, None]
    x = ((x - params["bn2_mean"][None, :, None, None])
         / jnp.sqrt(params["bn2_var"] + eps)[None, :, None, None]
         * params["bn2_gamma"][None, :, None, None]
         + params["bn2_beta"][None, :, None, None])
    return x


def init_params(key, nf):
    nfh = nf // 2
    ks = jax.random.split(key, 8)
    return {
        # UpSample's 1x1 conv: stored as (C_in, C_out)
        "w1": jax.random.normal(ks[0], (nf, nfh), jnp.float32) * 0.1,
        "b1": jax.random.normal(ks[1], (nfh,), jnp.float32) * 0.1,
        "bn1_gamma": 1.0 + 0.1 * jax.random.normal(ks[2], (nfh,), jnp.float32),
        "bn1_beta": 0.1 * jax.random.normal(ks[3], (nfh,), jnp.float32),
        "bn1_mean": 0.1 * jax.random.normal(ks[2], (nfh,), jnp.float32),
        "bn1_var": 0.5 + jax.random.uniform(ks[3], (nfh,), jnp.float32),
        # conv_normed: 1x1 conv nf -> nf
        "w2": jax.random.normal(ks[4], (nf, nf), jnp.float32) * 0.1,
        "b2": jax.random.normal(ks[5], (nf,), jnp.float32) * 0.1,
        "bn2_gamma": 1.0 + 0.1 * jax.random.normal(ks[6], (nf,), jnp.float32),
        "bn2_beta": 0.1 * jax.random.normal(ks[7], (nf,), jnp.float32),
        "bn2_mean": 0.1 * jax.random.normal(ks[6], (nf,), jnp.float32),
        "bn2_var": 0.5 + jax.random.uniform(ks[7], (nf,), jnp.float32),
    }


if __name__ == "__main__":
    key = jax.random.PRNGKey(0)
    k_lo, k_hi, k_p = jax.random.split(key, 3)

    # low-res input: (2, 8, 16, 16), high-res skip: (2, 4, 32, 32)
    N, nf, H, W = 2, 8, 16, 16
    layer_lo = jax.random.normal(k_lo, (N, nf, H, W), jnp.float32)
    layer_hi = jax.random.normal(k_hi, (N, nf // 2, 2 * H, 2 * W), jnp.float32)
    params = init_params(k_p, nf)

    out = jax.block_until_ready(combine_layers_forward(layer_lo, layer_hi, params))
    ref = jax.block_until_ready(_reference_forward(layer_lo, layer_hi, params))

    assert out.shape == (N, nf, 2 * H, 2 * W), out.shape
    np.testing.assert_allclose(np.asarray(out), np.asarray(ref), rtol=1e-5, atol=1e-5)

    print("KERNEL_OK")
</pallas_src>

<mosaic_0001>
module attributes {stable_mosaic.version = 11 : i64} {
  func.func @_combine_kernel(%arg0: i32, %arg1: i32, %arg2: memref<1x8x128xf32, #tpu.memory_space<vmem>>, %arg3: memref<1x4x512xf32, #tpu.memory_space<vmem>>, %arg4: memref<4x8xf32, #tpu.memory_space<vmem>>, %arg5: memref<8x4xf32, #tpu.memory_space<vmem>>, %arg6: memref<8x4xf32, #tpu.memory_space<vmem>>, %arg7: memref<4x1xf32, #tpu.memory_space<vmem>>, %arg8: memref<8x1xf32, #tpu.memory_space<vmem>>, %arg9: memref<16x32xf32, #tpu.memory_space<vmem>>, %arg10: memref<1x8x512xf32, #tpu.memory_space<vmem>>) attributes {dimension_semantics = [#tpu.dimension_semantics<parallel>, #tpu.dimension_semantics<parallel>], iteration_bounds = array<i64: 2, 2>, scalar_prefetch = 0 : i64, scratch_operands = 0 : i64, tpu.core_type = #tpu.core_type<tc>, window_params = [{transform_indices = @transform_0, window_bounds = array<i64: 1, 8, 128>}, {transform_indices = @transform_1, window_bounds = array<i64: 1, 4, 512>}, {pipeline_mode = #tpu.pipeline_mode<synchronous>, transform_indices = @transform_2, window_bounds = array<i64: 4, 8>}, {pipeline_mode = #tpu.pipeline_mode<synchronous>, transform_indices = @transform_3, window_bounds = array<i64: 8, 4>}, {pipeline_mode = #tpu.pipeline_mode<synchronous>, transform_indices = @transform_4, window_bounds = array<i64: 8, 4>}, {pipeline_mode = #tpu.pipeline_mode<synchronous>, transform_indices = @transform_5, window_bounds = array<i64: 4, 1>}, {pipeline_mode = #tpu.pipeline_mode<synchronous>, transform_indices = @transform_6, window_bounds = array<i64: 8, 1>}, {pipeline_mode = #tpu.pipeline_mode<synchronous>, transform_indices = @transform_7, window_bounds = array<i64: 16, 32>}, {transform_indices = @transform_8, window_bounds = array<i64: 1, 8, 512>}]} {
    %c0 = arith.constant 0 : index
    %c0_0 = arith.constant 0 : index
    %0 = vector.load %arg4[%c0, %c0_0] : memref<4x8xf32, #tpu.memory_space<vmem>>, vector<4x8xf32>
    %c0_1 = arith.constant 0 : index
    %c0_2 = arith.constant 0 : index
    %c0_3 = arith.constant 0 : index
    %1 = vector.load %arg2[%c0_1, %c0_2, %c0_3] : memref<1x8x128xf32, #tpu.memory_space<vmem>>, vector<1x8x128xf32>
    %2 = vector.shape_cast %1 : vector<1x8x128xf32> to vector<8x128xf32>
    %cst = arith.constant dense<0.000000e+00> : vector<4x128xf32>
    %3 = tpu.matmul %0, %2, %cst {dimension_numbers = #tpu.dot_dimension_numbers<[1], [0], [0], [1], [0, 0, 1, 1], [], []>} : vector<4x8xf32>, vector<8x128xf32>, vector<4x128xf32> -> vector<4x128xf32>
    %c0_4 = arith.constant 0 : index
    %c0_5 = arith.constant 0 : index
    %4 = vector.load %arg7[%c0_4, %c0_5] : memref<4x1xf32, #tpu.memory_space<vmem>>, vector<4x1xf32>
    %5 = vector.broadcast %4 : vector<4x1xf32> to vector<4x128xf32>
    %6 = arith.addf %3, %5 : vector<4x128xf32>
    %cst_6 = arith.constant 0.000000e+00 : f32
    %7 = vector.broadcast %cst_6 : f32 to vector<4x128xf32>
    %8 = arith.maximumf %6, %7 : vector<4x128xf32>
    %c0_7 = arith.constant 0 : index
    %c0_8 = arith.constant 0 : index
    %9 = vector.load %arg5[%c0_7, %c0_8] : memref<8x4xf32, #tpu.memory_space<vmem>>, vector<8x4xf32>
    %cst_9 = arith.constant dense<0.000000e+00> : vector<8x128xf32>
    %10 = tpu.matmul %9, %8, %cst_9 {dimension_numbers = #tpu.dot_dimension_numbers<[1], [0], [0], [1], [0, 0, 1, 1], [], []>} : vector<8x4xf32>, vector<4x128xf32>, vector<8x128xf32> -> vector<8x128xf32>
    %c0_10 = arith.constant 0 : index
    %c0_11 = arith.constant 0 : index
    %11 = vector.load %arg8[%c0_10, %c0_11] : memref<8x1xf32, #tpu.memory_space<vmem>>, vector<8x1xf32>
    %12 = vector.extract_strided_slice %10 {offsets = [0, 0], sizes = [8, 16], strides = [1, 1]} : vector<8x128xf32> to vector<8x16xf32>
    %c0_12 = arith.constant 0 : index
    %c0_13 = arith.constant 0 : index
    %13 = vector.load %arg9[%c0_12, %c0_13] : memref<16x32xf32, #tpu.memory_space<vmem>>, vector<16x32xf32>
    %cst_14 = arith.constant dense<0.000000e+00> : vector<8x32xf32>
    %14 = tpu.matmul %12, %13, %cst_14 {dimension_numbers = #tpu.dot_dimension_numbers<[1], [0], [0], [1], [0, 0, 1, 1], [], []>} : vector<8x16xf32>, vector<16x32xf32>, vector<8x32xf32> -> vector<8x32xf32>
    %c0_15 = arith.constant 0 : index
    %c0_16 = arith.constant 0 : index
    %15 = vector.load %arg6[%c0_15, %c0_16] : memref<8x4xf32, #tpu.memory_space<vmem>>, vector<8x4xf32>
    %c0_17 = arith.constant 0 : index
    %c0_18 = arith.constant 0 : index
    %c0_19 = arith.constant 0 : index
    %16 = vector.load %arg3[%c0_17, %c0_18, %c0_19] : memref<1x4x512xf32, #tpu.memory_space<vmem>>, vector<1x4x32xf32>
    %17 = vector.shape_cast %16 : vector<1x4x32xf32> to vector<4x32xf32>
    %cst_20 = arith.constant dense<0.000000e+00> : vector<8x32xf32>
    %18 = tpu.matmul %15, %17, %cst_20 {dimension_numbers = #tpu.dot_dimension_numbers<[1], [0], [0], [1], [0, 0, 1, 1], [], []>} : vector<8x4xf32>, vector<4x32xf32>, vector<8x32xf32> -> vector<8x32xf32>
    %19 = arith.addf %14, %18 : vector<8x32xf32>
    %20 = vector.broadcast %11 : vector<8x1xf32> to vector<8x32xf32>
    %21 = arith.addf %19, %20 : vector<8x32xf32>
    %c0_21 = arith.constant 0 : index
    %c0_22 = arith.constant 0 : index
    %c0_23 = arith.constant 0 : index
    %22 = vector.load %arg10[%c0_21, %c0_22, %c0_23] : memref<1x8x512xf32, #tpu.memory_space<vmem>>, vector<1x8x32xf32>
    %23 = vector.shape_cast %22 : vector<1x8x32xf32> to vector<8x32xf32>
    %24 = vector.shape_cast %21 : vector<8x32xf32> to vector<1x8x32xf32>
    tpu.vector_store %arg10[%c0_21, %c0_22, %c0_23], %24 {strides = array<i32>} : memref<1x8x512xf32, #tpu.memory_space<vmem>>, vector<1x8x32xf32>,
    %c0_24 = arith.constant 0 : index
    %c0_25 = arith.constant 0 : index
    %25 = vector.load %arg6[%c0_24, %c0_25] : memref<8x4xf32, #tpu.memory_space<vmem>>, vector<8x4xf32>
    %c0_26 = arith.constant 0 : index
    %c0_27 = arith.constant 0 : index
    %c32 = arith.constant 32 : index
    %26 = vector.load %arg3[%c0_26, %c0_27, %c32] : memref<1x4x512xf32, #tpu.memory_space<vmem>>, vector<1x4x32xf32>
    %27 = vector.shape_cast %26 : vector<1x4x32xf32> to vector<4x32xf32>
    %cst_28 = arith.constant dense<0.000000e+00> : vector<8x32xf32>
    %28 = tpu.matmul %25, %27, %cst_28 {dimension_numbers = #tpu.dot_dimension_numbers<[1], [0], [0], [1], [0, 0, 1, 1], [], []>} : vector<8x4xf32>, vector<4x32xf32>, vector<8x32xf32> -> vector<8x32xf32>
    %29 = arith.addf %14, %28 : vector<8x32xf32>
    %30 = vector.broadcast %11 : vector<8x1xf32> to vector<8x32xf32>
    %31 = arith.addf %29, %30 : vector<8x32xf32>
    %c0_29 = arith.constant 0 : index
    %c0_30 = arith.constant 0 : index
    %c32_31 = arith.constant 32 : index
    %32 = vector.load %arg10[%c0_29, %c0_30, %c32_31] : memref<1x8x512xf32, #tpu.memory_space<vmem>>, vector<1x8x32xf32>
    %33 = vector.shape_cast %32 : vector<1x8x32xf32> to vector<8x32xf32>
    %34 = vector.shape_cast %31 : vector<8x32xf32> to vector<1x8x32xf32>
    tpu.vector_store %arg10[%c0_29, %c0_30, %c32_31], %34 {strides = array<i32>} : memref<1x8x512xf32, #tpu.memory_space<vmem>>, vector<1x8x32xf32>,
    %35 = vector.extract_strided_slice %10 {offsets = [0, 16], sizes = [8, 16], strides = [1, 1]} : vector<8x128xf32> to vector<8x16xf32>
    %c0_32 = arith.constant 0 : index
    %c0_33 = arith.constant 0 : index
    %36 = vector.load %arg9[%c0_32, %c0_33] : memref<16x32xf32, #tpu.memory_space<vmem>>, vector<16x32xf32>
    %cst_34 = arith.constant dense<0.000000e+00> : vector<8x32xf32>
    %37 = tpu.matmul %35, %36, %cst_34 {dimension_numbers = #tpu.dot_dimension_numbers<[1], [0], [0], [1], [0, 0, 1, 1], [], []>} : vector<8x16xf32>, vector<16x32xf32>, vector<8x32xf32> -> vector<8x32xf32>
    %c0_35 = arith.constant 0 : index
    %c0_36 = arith.constant 0 : index
    %38 = vector.load %arg6[%c0_35, %c0_36] : memref<8x4xf32, #tpu.memory_space<vmem>>, vector<8x4xf32>
    %c0_37 = arith.constant 0 : index
    %c0_38 = arith.constant 0 : index
    %c64 = arith.constant 64 : index
    %39 = vector.load %arg3[%c0_37, %c0_38, %c64] : memref<1x4x512xf32, #tpu.memory_space<vmem>>, vector<1x4x32xf32>
    %40 = vector.shape_cast %39 : vector<1x4x32xf32> to vector<4x32xf32>
    %cst_39 = arith.constant dense<0.000000e+00> : vector<8x32xf32>
    %41 = tpu.matmul %38, %40, %cst_39 {dimension_numbers = #tpu.dot_dimension_numbers<[1], [0], [0], [1], [0, 0, 1, 1], [], []>} : vector<8x4xf32>, vector<4x32xf32>, vector<8x32xf32> -> vector<8x32xf32>
    %42 = arith.addf %37, %41 : vector<8x32xf32>
    %43 = vector.broadcast %11 : vector<8x1xf32> to vector<8x32xf32>
    %44 = arith.addf %42, %43 : vector<8x32xf32>
    %c0_40 = arith.constant 0 : index
    %c0_41 = arith.constant 0 : index
    %c64_42 = arith.constant 64 : index
    %45 = vector.load %arg10[%c0_40, %c0_41, %c64_42] : memref<1x8x512xf32, #tpu.memory_space<vmem>>, vector<1x8x32xf32>
    %46 = vector.shape_cast %45 : vector<1x8x32xf32> to vector<8x32xf32>
    %47 = vector.shape_cast %44 : vector<8x32xf32> to vector<1x8x32xf32>
    tpu.vector_store %arg10[%c0_40, %c0_41, %c64_42], %47 {strides = array<i32>} : memref<1x8x512xf32, #tpu.memory_space<vmem>>, vector<1x8x32xf32>,
    %c0_43 = arith.constant 0 : index
    %c0_44 = arith.constant 0 : index
    %48 = vector.load %arg6[%c0_43, %c0_44] : memref<8x4xf32, #tpu.memory_space<vmem>>, vector<8x4xf32>
    %c0_45 = arith.constant 0 : index
    %c0_46 = arith.constant 0 : index
    %c96 = arith.constant 96 : index
    %49 = vector.load %arg3[%c0_45, %c0_46, %c96] : memref<1x4x512xf32, #tpu.memory_space<vmem>>, vector<1x4x32xf32>
    %50 = vector.shape_cast %49 : vector<1x4x32xf32> to vector<4x32xf32>
    %cst_47 = arith.constant dense<0.000000e+00> : vector<8x32xf32>
    %51 = tpu.matmul %48, %50, %cst_47 {dimension_numbers = #tpu.dot_dimension_numbers<[1], [0], [0], [1], [0, 0, 1, 1], [], []>} : vector<8x4xf32>, vector<4x32xf32>, vector<8x32xf32> -> vector<8x32xf32>
    %52 = arith.addf %37, %51 : vector<8x32xf32>
    %53 = vector.broadcast %11 : vector<8x1xf32> to vector<8x32xf32>
    %54 = arith.addf %52, %53 : vector<8x32xf32>
    %c0_48 = arith.constant 0 : index
    %c0_49 = arith.constant 0 : index
    %c96_50 = arith.constant 96 : index
    %55 = vector.load %arg10[%c0_48, %c0_49, %c96_50] : memref<1x8x512xf32, #tpu.memory_space<vmem>>, vector<1x8x32xf32>
    %56 = vector.shape_cast %55 : vector<1x8x32xf32> to vector<8x32xf32>
    %57 = vector.shape_cast %54 : vector<8x32xf32> to vector<1x8x32xf32>
    tpu.vector_store %arg10[%c0_48, %c0_49, %c96_50], %57 {strides = array<i32>} : memref<1x8x512xf32, #tpu.memory_space<vmem>>, vector<1x8x32xf32>,
    %58 = vector.extract_strided_slice %10 {offsets = [0, 32], sizes = [8, 16], strides = [1, 1]} : vector<8x128xf32> to vector<8x16xf32>
    %c0_51 = arith.constant 0 : index
    %c0_52 = arith.constant 0 : index
    %59 = vector.load %arg9[%c0_51, %c0_52] : memref<16x32xf32, #tpu.memory_space<vmem>>, vector<16x32xf32>
    %cst_53 = arith.constant dense<0.000000e+00> : vector<8x32xf32>
    %60 = tpu.matmul %58, %59, %cst_53 {dimension_numbers = #tpu.dot_dimension_numbers<[1], [0], [0], [1], [0, 0, 1, 1], [], []>} : vector<8x16xf32>, vector<16x32xf32>, vector<8x32xf32> -> vector<8x32xf32>
    %c0_54 = arith.constant 0 : index
    %c0_55 = arith.constant 0 : index
    %61 = vector.load %arg6[%c0_54, %c0_55] : memref<8x4xf32, #tpu.memory_space<vmem>>, vector<8x4xf32>
    %c0_56 = arith.constant 0 : index
    %c0_57 = arith.constant 0 : index
    %c128 = arith.constant 128 : index
    %62 = vector.load %arg3[%c0_56, %c0_57, %c128] : memref<1x4x512xf32, #tpu.memory_space<vmem>>, vector<1x4x32xf32>
    %63 = vector.shape_cast %62 : vector<1x4x32xf32> to vector<4x32xf32>
    %cst_58 = arith.constant dense<0.000000e+00> : vector<8x32xf32>
    %64 = tpu.matmul %61, %63, %cst_58 {dimension_numbers = #tpu.dot_dimension_numbers<[1], [0], [0], [1], [0, 0, 1, 1], [], []>} : vector<8x4xf32>, vector<4x32xf32>, vector<8x32xf32> -> vector<8x32xf32>
    %65 = arith.addf %60, %64 : vector<8x32xf32>
    %66 = vector.broadcast %11 : vector<8x1xf32> to vector<8x32xf32>
    %67 = arith.addf %65, %66 : vector<8x32xf32>
    %c0_59 = arith.constant 0 : index
    %c0_60 = arith.constant 0 : index
    %c128_61 = arith.constant 128 : index
    %68 = vector.load %arg10[%c0_59, %c0_60, %c128_61] : memref<1x8x512xf32, #tpu.memory_space<vmem>>, vector<1x8x32xf32>
    %69 = vector.shape_cast %68 : vector<1x8x32xf32> to vector<8x32xf32>
    %70 = vector.shape_cast %67 : vector<8x32xf32> to vector<1x8x32xf32>
    tpu.vector_store %arg10[%c0_59, %c0_60, %c128_61], %70 {strides = array<i32>} : memref<1x8x512xf32, #tpu.memory_space<vmem>>, vector<1x8x32xf32>,
    %c0_62 = arith.constant 0 : index
    %c0_63 = arith.constant 0 : index
    %71 = vector.load %arg6[%c0_62, %c0_63] : memref<8x4xf32, #tpu.memory_space<vmem>>, vector<8x4xf32>
    %c0_64 = arith.constant 0 : index
    %c0_65 = arith.constant 0 : index
    %c160 = arith.constant 160 : index
    %72 = vector.load %arg3[%c0_64, %c0_65, %c160] : memref<1x4x512xf32, #tpu.memory_space<vmem>>, vector<1x4x32xf32>
    %73 = vector.shape_cast %72 : vector<1x4x32xf32> to vector<4x32xf32>
    %cst_66 = arith.constant dense<0.000000e+00> : vector<8x32xf32>
    %74 = tpu.matmul %71, %73, %cst_66 {dimension_numbers = #tpu.dot_dimension_numbers<[1], [0], [0], [1], [0, 0, 1, 1], [], []>} : vector<8x4xf32>, vector<4x32xf32>, vector<8x32xf32> -> vector<8x32xf32>
    %75 = arith.addf %60, %74 : vector<8x32xf32>
    %76 = vector.broadcast %11 : vector<8x1xf32> to vector<8x32xf32>
    %77 = arith.addf %75, %76 : vector<8x32xf32>
    %c0_67 = arith.constant 0 : index
    %c0_68 = arith.constant 0 : index
    %c160_69 = arith.constant 160 : index
    %78 = vector.load %arg10[%c0_67, %c0_68, %c160_69] : memref<1x8x512xf32, #tpu.memory_space<vmem>>, vector<1x8x32xf32>
    %79 = vector.shape_cast %78 : vector<1x8x32xf32> to vector<8x32xf32>
    %80 = vector.shape_cast %77 : vector<8x32xf32> to vector<1x8x32xf32>
    tpu.vector_store %arg10[%c0_67, %c0_68, %c160_69], %80 {strides = array<i32>} : memref<1x8x512xf32, #tpu.memory_space<vmem>>, vector<1x8x32xf32>,
    %81 = vector.extract_strided_slice %10 {offsets = [0, 48], sizes = [8, 16], strides = [1, 1]} : vector<8x128xf32> to vector<8x16xf32>
    %c0_70 = arith.constant 0 : index
    %c0_71 = arith.constant 0 : index
    %82 = vector.load %arg9[%c0_70, %c0_71] : memref<16x32xf32, #tpu.memory_space<vmem>>, vector<16x32xf32>
    %cst_72 = arith.constant dense<0.000000e+00> : vector<8x32xf32>
    %83 = tpu.matmul %81, %82, %cst_72 {dimension_numbers = #tpu.dot_dimension_numbers<[1], [0], [0], [1], [0, 0, 1, 1], [], []>} : vector<8x16xf32>, vector<16x32xf32>, vector<8x32xf32> -> vector<8x32xf32>
    %c0_73 = arith.constant 0 : index
    %c0_74 = arith.constant 0 : index
    %84 = vector.load %arg6[%c0_73, %c0_74] : memref<8x4xf32, #tpu.memory_space<vmem>>, vector<8x4xf32>
    %c0_75 = arith.constant 0 : index
    %c0_76 = arith.constant 0 : index
    %c192 = arith.constant 192 : index
    %85 = vector.load %arg3[%c0_75, %c0_76, %c192] : memref<1x4x512xf32, #tpu.memory_space<vmem>>, vector<1x4x32xf32>
    %86 = vector.shape_cast %85 : vector<1x4x32xf32> to vector<4x32xf32>
    %cst_77 = arith.constant dense<0.000000e+00> : vector<8x32xf32>
    %87 = tpu.matmul %84, %86, %cst_77 {dimension_numbers = #tpu.dot_dimension_numbers<[1], [0], [0], [1], [0, 0, 1, 1], [], []>} : vector<8x4xf32>, vector<4x32xf32>, vector<8x32xf32> -> vector<8x32xf32>
    %88 = arith.addf %83, %87 : vector<8x32xf32>
    %89 = vector.broadcast %11 : vector<8x1xf32> to vector<8x32xf32>
    %90 = arith.addf %88, %89 : vector<8x32xf32>
    %c0_78 = arith.constant 0 : index
    %c0_79 = arith.constant 0 : index
    %c192_80 = arith.constant 192 : index
    %91 = vector.load %arg10[%c0_78, %c0_79, %c192_80] : memref<1x8x512xf32, #tpu.memory_space<vmem>>, vector<1x8x32xf32>
    %92 = vector.shape_cast %91 : vector<1x8x32xf32> to vector<8x32xf32>
    %93 = vector.shape_cast %90 : vector<8x32xf32> to vector<1x8x32xf32>
    tpu.vector_store %arg10[%c0_78, %c0_79, %c192_80], %93 {strides = array<i32>} : memref<1x8x512xf32, #tpu.memory_space<vmem>>, vector<1x8x32xf32>,
    %c0_81 = arith.constant 0 : index
    %c0_82 = arith.constant 0 : index
    %94 = vector.load %arg6[%c0_81, %c0_82] : memref<8x4xf32, #tpu.memory_space<vmem>>, vector<8x4xf32>
    %c0_83 = arith.constant 0 : index
    %c0_84 = arith.constant 0 : index
    %c224 = arith.constant 224 : index
    %95 = vector.load %arg3[%c0_83, %c0_84, %c224] : memref<1x4x512xf32, #tpu.memory_space<vmem>>, vector<1x4x32xf32>
    %96 = vector.shape_cast %95 : vector<1x4x32xf32> to vector<4x32xf32>
    %cst_85 = arith.constant dense<0.000000e+00> : vector<8x32xf32>
    %97 = tpu.matmul %94, %96, %cst_85 {dimension_numbers = #tpu.dot_dimension_numbers<[1], [0], [0], [1], [0, 0, 1, 1], [], []>} : vector<8x4xf32>, vector<4x32xf32>, vector<8x32xf32> -> vector<8x32xf32>
    %98 = arith.addf %83, %97 : vector<8x32xf32>
    %99 = vector.broadcast %11 : vector<8x1xf32> to vector<8x32xf32>
    %100 = arith.addf %98, %99 : vector<8x32xf32>
    %c0_86 = arith.constant 0 : index
    %c0_87 = arith.constant 0 : index
    %c224_88 = arith.constant 224 : index
    %101 = vector.load %arg10[%c0_86, %c0_87, %c224_88] : memref<1x8x512xf32, #tpu.memory_space<vmem>>, vector<1x8x32xf32>
    %102 = vector.shape_cast %101 : vector<1x8x32xf32> to vector<8x32xf32>
    %103 = vector.shape_cast %100 : vector<8x32xf32> to vector<1x8x32xf32>
    tpu.vector_store %arg10[%c0_86, %c0_87, %c224_88], %103 {strides = array<i32>} : memref<1x8x512xf32, #tpu.memory_space<vmem>>, vector<1x8x32xf32>,
    %104 = vector.extract_strided_slice %10 {offsets = [0, 64], sizes = [8, 16], strides = [1, 1]} : vector<8x128xf32> to vector<8x16xf32>
    %c0_89 = arith.constant 0 : index
    %c0_90 = arith.constant 0 : index
    %105 = vector.load %arg9[%c0_89, %c0_90] : memref<16x32xf32, #tpu.memory_space<vmem>>, vector<16x32xf32>
    %cst_91 = arith.constant dense<0.000000e+00> : vector<8x32xf32>
    %106 = tpu.matmul %104, %105, %cst_91 {dimension_numbers = #tpu.dot_dimension_numbers<[1], [0], [0], [1], [0, 0, 1, 1], [], []>} : vector<8x16xf32>, vector<16x32xf32>, vector<8x32xf32> -> vector<8x32xf32>
    %c0_92 = arith.constant 0 : index
    %c0_93 = arith.constant 0 : index
    %107 = vector.load %arg6[%c0_92, %c0_93] : memref<8x4xf32, #tpu.memory_space<vmem>>, vector<8x4xf32>
    %c0_94 = arith.constant 0 : index
    %c0_95 = arith.constant 0 : index
    %c256 = arith.constant 256 : index
    %108 = vector.load %arg3[%c0_94, %c0_95, %c256] : memref<1x4x512xf32, #tpu.memory_space<vmem>>, vector<1x4x32xf32>
    %109 = vector.shape_cast %108 : vector<1x4x32xf32> to vector<4x32xf32>
    %cst_96 = arith.constant dense<0.000000e+00> : vector<8x32xf32>
    %110 = tpu.matmul %107, %109, %cst_96 {dimension_numbers = #tpu.dot_dimension_numbers<[1], [0], [0], [1], [0, 0, 1, 1], [], []>} : vector<8x4xf32>, vector<4x32xf32>, vector<8x32xf32> -> vector<8x32xf32>
    %111 = arith.addf %106, %110 : vector<8x32xf32>
    %112 = vector.broadcast %11 : vector<8x1xf32> to vector<8x32xf32>
    %113 = arith.addf %111, %112 : vector<8x32xf32>
    %c0_97 = arith.constant 0 : index
    %c0_98 = arith.constant 0 : index
    %c256_99 = arith.constant 256 : index
    %114 = vector.load %arg10[%c0_97, %c0_98, %c256_99] : memref<1x8x512xf32, #tpu.memory_space<vmem>>, vector<1x8x32xf32>
    %115 = vector.shape_cast %114 : vector<1x8x32xf32> to vector<8x32xf32>
    %116 = vector.shape_cast %113 : vector<8x32xf32> to vector<1x8x32xf32>
    tpu.vector_store %arg10[%c0_97, %c0_98, %c256_99], %116 {strides = array<i32>} : memref<1x8x512xf32, #tpu.memory_space<vmem>>, vector<1x8x32xf32>,
    %c0_100 = arith.constant 0 : index
    %c0_101 = arith.constant 0 : index
    %117 = vector.load %arg6[%c0_100, %c0_101] : memref<8x4xf32, #tpu.memory_space<vmem>>, vector<8x4xf32>
    %c0_102 = arith.constant 0 : index
    %c0_103 = arith.constant 0 : index
    %c288 = arith.constant 288 : index
    %118 = vector.load %arg3[%c0_102, %c0_103, %c288] : memref<1x4x512xf32, #tpu.memory_space<vmem>>, vector<1x4x32xf32>
    %119 = vector.shape_cast %118 : vector<1x4x32xf32> to vector<4x32xf32>
    %cst_104 = arith.constant dense<0.000000e+00> : vector<8x32xf32>
    %120 = tpu.matmul %117, %119, %cst_104 {dimension_numbers = #tpu.dot_dimension_numbers<[1], [0], [0], [1], [0, 0, 1, 1], [], []>} : vector<8x4xf32>, vector<4x32xf32>, vector<8x32xf32> -> vector<8x32xf32>
    %121 = arith.addf %106, %120 : vector<8x32xf32>
    %122 = vector.broadcast %11 : vector<8x1xf32> to vector<8x32xf32>
    %123 = arith.addf %121, %122 : vector<8x32xf32>
    %c0_105 = arith.constant 0 : index
    %c0_106 = arith.constant 0 : index
    %c288_107 = arith.constant 288 : index
    %124 = vector.load %arg10[%c0_105, %c0_106, %c288_107] : memref<1x8x512xf32, #tpu.memory_space<vmem>>, vector<1x8x32xf32>
    %125 = vector.shape_cast %124 : vector<1x8x32xf32> to vector<8x32xf32>
    %126 = vector.shape_cast %123 : vector<8x32xf32> to vector<1x8x32xf32>
    tpu.vector_store %arg10[%c0_105, %c0_106, %c288_107], %126 {strides = array<i32>} : memref<1x8x512xf32, #tpu.memory_space<vmem>>, vector<1x8x32xf32>,
    %127 = vector.extract_strided_slice %10 {offsets = [0, 80], sizes = [8, 16], strides = [1, 1]} : vector<8x128xf32> to vector<8x16xf32>
    %c0_108 = arith.constant 0 : index
    %c0_109 = arith.constant 0 : index
    %128 = vector.load %arg9[%c0_108, %c0_109] : memref<16x32xf32, #tpu.memory_space<vmem>>, vector<16x32xf32>
    %cst_110 = arith.constant dense<0.000000e+00> : vector<8x32xf32>
    %129 = tpu.matmul %127, %128, %cst_110 {dimension_numbers = #tpu.dot_dimension_numbers<[1], [0], [0], [1], [0, 0, 1, 1], [], []>} : vector<8x16xf32>, vector<16x32xf32>, vector<8x32xf32> -> vector<8x32xf32>
    %c0_111 = arith.constant 0 : index
    %c0_112 = arith.constant 0 : index
    %130 = vector.load %arg6[%c0_111, %c0_112] : memref<8x4xf32, #tpu.memory_space<vmem>>, vector<8x4xf32>
    %c0_113 = arith.constant 0 : index
    %c0_114 = arith.constant 0 : index
    %c320 = arith.constant 320 : index
    %131 = vector.load %arg3[%c0_113, %c0_114, %c320] : memref<1x4x512xf32, #tpu.memory_space<vmem>>, vector<1x4x32xf32>
    %132 = vector.shape_cast %131 : vector<1x4x32xf32> to vector<4x32xf32>
    %cst_115 = arith.constant dense<0.000000e+00> : vector<8x32xf32>
    %133 = tpu.matmul %130, %132, %cst_115 {dimension_numbers = #tpu.dot_dimension_numbers<[1], [0], [0], [1], [0, 0, 1, 1], [], []>} : vector<8x4xf32>, vector<4x32xf32>, vector<8x32xf32> -> vector<8x32xf32>
    %134 = arith.addf %129, %133 : vector<8x32xf32>
    %135 = vector.broadcast %11 : vector<8x1xf32> to vector<8x32xf32>
    %136 = arith.addf %134, %135 : vector<8x32xf32>
    %c0_116 = arith.constant 0 : index
    %c0_117 = arith.constant 0 : index
    %c320_118 = arith.constant 320 : index
    %137 = vector.load %arg10[%c0_116, %c0_117, %c320_118] : memref<1x8x512xf32, #tpu.memory_space<vmem>>, vector<1x8x32xf32>
    %138 = vector.shape_cast %137 : vector<1x8x32xf32> to vector<8x32xf32>
    %139 = vector.shape_cast %136 : vector<8x32xf32> to vector<1x8x32xf32>
    tpu.vector_store %arg10[%c0_116, %c0_117, %c320_118], %139 {strides = array<i32>} : memref<1x8x512xf32, #tpu.memory_space<vmem>>, vector<1x8x32xf32>,
    %c0_119 = arith.constant 0 : index
    %c0_120 = arith.constant 0 : index
    %140 = vector.load %arg6[%c0_119, %c0_120] : memref<8x4xf32, #tpu.memory_space<vmem>>, vector<8x4xf32>
    %c0_121 = arith.constant 0 : index
    %c0_122 = arith.constant 0 : index
    %c352 = arith.constant 352 : index
    %141 = vector.load %arg3[%c0_121, %c0_122, %c352] : memref<1x4x512xf32, #tpu.memory_space<vmem>>, vector<1x4x32xf32>
    %142 = vector.shape_cast %141 : vector<1x4x32xf32> to vector<4x32xf32>
    %cst_123 = arith.constant dense<0.000000e+00> : vector<8x32xf32>
    %143 = tpu.matmul %140, %142, %cst_123 {dimension_numbers = #tpu.dot_dimension_numbers<[1], [0], [0], [1], [0, 0, 1, 1], [], []>} : vector<8x4xf32>, vector<4x32xf32>, vector<8x32xf32> -> vector<8x32xf32>
    %144 = arith.addf %129, %143 : vector<8x32xf32>
    %145 = vector.broadcast %11 : vector<8x1xf32> to vector<8x32xf32>
    %146 = arith.addf %144, %145 : vector<8x32xf32>
    %c0_124 = arith.constant 0 : index
    %c0_125 = arith.constant 0 : index
    %c352_126 = arith.constant 352 : index
    %147 = vector.load %arg10[%c0_124, %c0_125, %c352_126] : memref<1x8x512xf32, #tpu.memory_space<vmem>>, vector<1x8x32xf32>
    %148 = vector.shape_cast %147 : vector<1x8x32xf32> to vector<8x32xf32>
    %149 = vector.shape_cast %146 : vector<8x32xf32> to vector<1x8x32xf32>
    tpu.vector_store %arg10[%c0_124, %c0_125, %c352_126], %149 {strides = array<i32>} : memref<1x8x512xf32, #tpu.memory_space<vmem>>, vector<1x8x32xf32>,
    %150 = vector.extract_strided_slice %10 {offsets = [0, 96], sizes = [8, 16], strides = [1, 1]} : vector<8x128xf32> to vector<8x16xf32>
    %c0_127 = arith.constant 0 : index
    %c0_128 = arith.constant 0 : index
    %151 = vector.load %arg9[%c0_127, %c0_128] : memref<16x32xf32, #tpu.memory_space<vmem>>, vector<16x32xf32>
    %cst_129 = arith.constant dense<0.000000e+00> : vector<8x32xf32>
    %152 = tpu.matmul %150, %151, %cst_129 {dimension_numbers = #tpu.dot_dimension_numbers<[1], [0], [0], [1], [0, 0, 1, 1], [], []>} : vector<8x16xf32>, vector<16x32xf32>, vector<8x32xf32> -> vector<8x32xf32>
    %c0_130 = arith.constant 0 : index
    %c0_131 = arith.constant 0 : index
    %153 = vector.load %arg6[%c0_130, %c0_131] : memref<8x4xf32, #tpu.memory_space<vmem>>, vector<8x4xf32>
    %c0_132 = arith.constant 0 : index
    %c0_133 = arith.constant 0 : index
    %c384 = arith.constant 384 : index
    %154 = vector.load %arg3[%c0_132, %c0_133, %c384] : memref<1x4x512xf32, #tpu.memory_space<vmem>>, vector<1x4x32xf32>
    %155 = vector.shape_cast %154 : vector<1x4x32xf32> to vector<4x32xf32>
    %cst_134 = arith.constant dense<0.000000e+00> : vector<8x32xf32>
    %156 = tpu.matmul %153, %155, %cst_134 {dimension_numbers = #tpu.dot_dimension_numbers<[1], [0], [0], [1], [0, 0, 1, 1], [], []>} : vector<8x4xf32>, vector<4x32xf32>, vector<8x32xf32> -> vector<8x32xf32>
    %157 = arith.addf %152, %156 : vector<8x32xf32>
    %158 = vector.broadcast %11 : vector<8x1xf32> to vector<8x32xf32>
    %159 = arith.addf %157, %158 : vector<8x32xf32>
    %c0_135 = arith.constant 0 : index
    %c0_136 = arith.constant 0 : index
    %c384_137 = arith.constant 384 : index
    %160 = vector.load %arg10[%c0_135, %c0_136, %c384_137] : memref<1x8x512xf32, #tpu.memory_space<vmem>>, vector<1x8x32xf32>
    %161 = vector.shape_cast %160 : vector<1x8x32xf32> to vector<8x32xf32>
    %162 = vector.shape_cast %159 : vector<8x32xf32> to vector<1x8x32xf32>
    tpu.vector_store %arg10[%c0_135, %c0_136, %c384_137], %162 {strides = array<i32>} : memref<1x8x512xf32, #tpu.memory_space<vmem>>, vector<1x8x32xf32>,
    %c0_138 = arith.constant 0 : index
    %c0_139 = arith.constant 0 : index
    %163 = vector.load %arg6[%c0_138, %c0_139] : memref<8x4xf32, #tpu.memory_space<vmem>>, vector<8x4xf32>
    %c0_140 = arith.constant 0 : index
    %c0_141 = arith.constant 0 : index
    %c416 = arith.constant 416 : index
    %164 = vector.load %arg3[%c0_140, %c0_141, %c416] : memref<1x4x512xf32, #tpu.memory_space<vmem>>, vector<1x4x32xf32>
    %165 = vector.shape_cast %164 : vector<1x4x32xf32> to vector<4x32xf32>
    %cst_142 = arith.constant dense<0.000000e+00> : vector<8x32xf32>
    %166 = tpu.matmul %163, %165, %cst_142 {dimension_numbers = #tpu.dot_dimension_numbers<[1], [0], [0], [1], [0, 0, 1, 1], [], []>} : vector<8x4xf32>, vector<4x32xf32>, vector<8x32xf32> -> vector<8x32xf32>
    %167 = arith.addf %152, %166 : vector<8x32xf32>
    %168 = vector.broadcast %11 : vector<8x1xf32> to vector<8x32xf32>
    %169 = arith.addf %167, %168 : vector<8x32xf32>
    %c0_143 = arith.constant 0 : index
    %c0_144 = arith.constant 0 : index
    %c416_145 = arith.constant 416 : index
    %170 = vector.load %arg10[%c0_143, %c0_144, %c416_145] : memref<1x8x512xf32, #tpu.memory_space<vmem>>, vector<1x8x32xf32>
    %171 = vector.shape_cast %170 : vector<1x8x32xf32> to vector<8x32xf32>
    %172 = vector.shape_cast %169 : vector<8x32xf32> to vector<1x8x32xf32>
    tpu.vector_store %arg10[%c0_143, %c0_144, %c416_145], %172 {strides = array<i32>} : memref<1x8x512xf32, #tpu.memory_space<vmem>>, vector<1x8x32xf32>,
    %173 = vector.extract_strided_slice %10 {offsets = [0, 112], sizes = [8, 16], strides = [1, 1]} : vector<8x128xf32> to vector<8x16xf32>
    %c0_146 = arith.constant 0 : index
    %c0_147 = arith.constant 0 : index
    %174 = vector.load %arg9[%c0_146, %c0_147] : memref<16x32xf32, #tpu.memory_space<vmem>>, vector<16x32xf32>
    %cst_148 = arith.constant dense<0.000000e+00> : vector<8x32xf32>
    %175 = tpu.matmul %173, %174, %cst_148 {dimension_numbers = #tpu.dot_dimension_numbers<[1], [0], [0], [1], [0, 0, 1, 1], [], []>} : vector<8x16xf32>, vector<16x32xf32>, vector<8x32xf32> -> vector<8x32xf32>
    %c0_149 = arith.constant 0 : index
    %c0_150 = arith.constant 0 : index
    %176 = vector.load %arg6[%c0_149, %c0_150] : memref<8x4xf32, #tpu.memory_space<vmem>>, vector<8x4xf32>
    %c0_151 = arith.constant 0 : index
    %c0_152 = arith.constant 0 : index
    %c448 = arith.constant 448 : index
    %177 = vector.load %arg3[%c0_151, %c0_152, %c448] : memref<1x4x512xf32, #tpu.memory_space<vmem>>, vector<1x4x32xf32>
    %178 = vector.shape_cast %177 : vector<1x4x32xf32> to vector<4x32xf32>
    %cst_153 = arith.constant dense<0.000000e+00> : vector<8x32xf32>
    %179 = tpu.matmul %176, %178, %cst_153 {dimension_numbers = #tpu.dot_dimension_numbers<[1], [0], [0], [1], [0, 0, 1, 1], [], []>} : vector<8x4xf32>, vector<4x32xf32>, vector<8x32xf32> -> vector<8x32xf32>
    %180 = arith.addf %175, %179 : vector<8x32xf32>
    %181 = vector.broadcast %11 : vector<8x1xf32> to vector<8x32xf32>
    %182 = arith.addf %180, %181 : vector<8x32xf32>
    %c0_154 = arith.constant 0 : index
    %c0_155 = arith.constant 0 : index
    %c448_156 = arith.constant 448 : index
    %183 = vector.load %arg10[%c0_154, %c0_155, %c448_156] : memref<1x8x512xf32, #tpu.memory_space<vmem>>, vector<1x8x32xf32>
    %184 = vector.shape_cast %183 : vector<1x8x32xf32> to vector<8x32xf32>
    %185 = vector.shape_cast %182 : vector<8x32xf32> to vector<1x8x32xf32>
    tpu.vector_store %arg10[%c0_154, %c0_155, %c448_156], %185 {strides = array<i32>} : memref<1x8x512xf32, #tpu.memory_space<vmem>>, vector<1x8x32xf32>,
    %c0_157 = arith.constant 0 : index
    %c0_158 = arith.constant 0 : index
    %186 = vector.load %arg6[%c0_157, %c0_158] : memref<8x4xf32, #tpu.memory_space<vmem>>, vector<8x4xf32>
    %c0_159 = arith.constant 0 : index
    %c0_160 = arith.constant 0 : index
    %c480 = arith.constant 480 : index
    %187 = vector.load %arg3[%c0_159, %c0_160, %c480] : memref<1x4x512xf32, #tpu.memory_space<vmem>>, vector<1x4x32xf32>
    %188 = vector.shape_cast %187 : vector<1x4x32xf32> to vector<4x32xf32>
    %cst_161 = arith.constant dense<0.000000e+00> : vector<8x32xf32>
    %189 = tpu.matmul %186, %188, %cst_161 {dimension_numbers = #tpu.dot_dimension_numbers<[1], [0], [0], [1], [0, 0, 1, 1], [], []>} : vector<8x4xf32>, vector<4x32xf32>, vector<8x32xf32> -> vector<8x32xf32>
    %190 = arith.addf %175, %189 : vector<8x32xf32>
    %191 = vector.broadcast %11 : vector<8x1xf32> to vector<8x32xf32>
    %192 = arith.addf %190, %191 : vector<8x32xf32>
    %c0_162 = arith.constant 0 : index
    %c0_163 = arith.constant 0 : index
    %c480_164 = arith.constant 480 : index
    %193 = vector.load %arg10[%c0_162, %c0_163, %c480_164] : memref<1x8x512xf32, #tpu.memory_space<vmem>>, vector<1x8x32xf32>
    %194 = vector.shape_cast %193 : vector<1x8x32xf32> to vector<8x32xf32>
    %195 = vector.shape_cast %192 : vector<8x32xf32> to vector<1x8x32xf32>
    tpu.vector_store %arg10[%c0_162, %c0_163, %c480_164], %195 {strides = array<i32>} : memref<1x8x512xf32, #tpu.memory_space<vmem>>, vector<1x8x32xf32>,
    return
  }
  func.func @transform_0(%arg0: i32, %arg1: i32) -> (i32, i32, i32) {
    %c0_i32 = arith.constant 0 : i32
    %c0_i32_0 = arith.constant 0 : i32
    return %arg0, %c0_i32, %arg1 : i32, i32, i32
  }
  func.func @transform_1(%arg0: i32, %arg1: i32) -> (i32, i32, i32) {
    %c0_i32 = arith.constant 0 : i32
    %c0_i32_0 = arith.constant 0 : i32
    return %arg0, %c0_i32, %arg1 : i32, i32, i32
  }
  func.func @transform_2(%arg0: i32, %arg1: i32) -> (i32, i32) {
    %c0_i32 = arith.constant 0 : i32
    %c0_i32_0 = arith.constant 0 : i32
    %c0_i32_1 = arith.constant 0 : i32
    return %c0_i32, %c0_i32_0 : i32, i32
  }
  func.func @transform_3(%arg0: i32, %arg1: i32) -> (i32, i32) {
    %c0_i32 = arith.constant 0 : i32
    %c0_i32_0 = arith.constant 0 : i32
    %c0_i32_1 = arith.constant 0 : i32
    return %c0_i32, %c0_i32_0 : i32, i32
  }
  func.func @transform_4(%arg0: i32, %arg1: i32) -> (i32, i32) {
    %c0_i32 = arith.constant 0 : i32
    %c0_i32_0 = arith.constant 0 : i32
    %c0_i32_1 = arith.constant 0 : i32
    return %c0_i32, %c0_i32_0 : i32, i32
  }
  func.func @transform_5(%arg0: i32, %arg1: i32) -> (i32, i32) {
    %c0_i32 = arith.constant 0 : i32
    %c0_i32_0 = arith.constant 0 : i32
    %c0_i32_1 = arith.constant 0 : i32
    return %c0_i32, %c0_i32_0 : i32, i32
  }
  func.func @transform_6(%arg0: i32, %arg1: i32) -> (i32, i32) {
    %c0_i32 = arith.constant 0 : i32
    %c0_i32_0 = arith.constant 0 : i32
    %c0_i32_1 = arith.constant 0 : i32
    return %c0_i32, %c0_i32_0 : i32, i32
  }
  func.func @transform_7(%arg0: i32, %arg1: i32) -> (i32, i32) {
    %c0_i32 = arith.constant 0 : i32
    %c0_i32_0 = arith.constant 0 : i32
    %c0_i32_1 = arith.constant 0 : i32
    return %c0_i32, %c0_i32_0 : i32, i32
  }
  func.func @transform_8(%arg0: i32, %arg1: i32) -> (i32, i32, i32) {
    %c0_i32 = arith.constant 0 : i32
    %c0_i32_0 = arith.constant 0 : i32
    return %arg0, %c0_i32, %arg1 : i32, i32, i32
  }
}

</mosaic_0001>

<bundles_post_ra>
// kernel: combine_layers_forward.1
= control target key start
LH: loop header
LB: loop body
LE: loop exit
PB: predicated region body
PF: predicated region fallthrough
CT: control target
= control target key end

     0   :  { %s1557_s27 = smov 0   ;;  %s1559_s28 = smov 0   ;;  %s1814_s0 = inlined_call_operand.vmem [shape: f32[2,8,256], index: 0, kind: input, shape index: {}]   ;;  %s1815_s1 = inlined_call_operand.vmem [shape: f32[2,4,1024], index: 1, kind: input, shape index: {}]   ;;  %s1816_s2 = inlined_call_operand.vmem [shape: f32[4,8], index: 2, kind: input, shape index: {}]   ;;  %s1817_s3 = inlined_call_operand.vmem [shape: f32[8,4], index: 3, kind: input, shape index: {}]   ;;  %s1818_s4 = inlined_call_operand.vmem [shape: f32[8,4], index: 4, kind: input, shape index: {}]   ;;  %s1819_s5 = inlined_call_operand.vmem [shape: f32[4,1], index: 5, kind: input, shape index: {}]   ;;  %s1820_s6 = inlined_call_operand.vmem [shape: f32[8,1], index: 6, kind: input, shape index: {}]   ;;  %s1821_s7 = inlined_call_operand.vmem [shape: f32[16,32], index: 7, kind: input, shape index: {}]   ;;  %s1822_s8 = inlined_call_operand.vmem [shape: f32[2,8,1024], index: 8, kind: output, shape index: {}]  }
   0x1   :  { %s1561_s29 = smov 0   ;;  %s1563_s30 = smov 0  }
   0x2   :  { %s1565_s9 = smov 0  }
   0x3 LB: > { %s27_s10 = sadd.s32 1, %s1494_s29  ;;  %s30_s11 = sadd.s32 1, %s1498_s30  ;;  %s1502_s9 = sphi %s1565_s9, %s18_s9   ;;  %s1498_s30 = sphi %s1563_s30, %s1826_s30   ;;  %s1494_s29 = sphi %s1561_s29, %s1825_s29   ;;  %s1490_s28 = sphi %s1559_s28, %s1824_s28   ;;  %s1486_s27 = sphi %s1557_s27, %s1823_s27  }
   0x4   : > { %p28_p0 = scmp.ge.s32.totalorder %s27_s10, 2  ;;  %p1360_p1 = scmp.ge.s32.totalorder %s1502_s9, 1 }
   0x5   : > { %p298_p2 = scmp.lt.s32.totalorder %s1502_s9, 5 }
   0x6   : > { %s1828_s10 = smov (%p28_p0, %s27_s10), 0  ;;  %s1830_s11 = smov (!%p28_p0, %s30_s11), %s1498_s30 }
   0x7   : > { %p299_p3 = pnand %p1360_p1, %p298_p2  ;;  %p32_p4 = scmp.ge.s32.totalorder %s1830_s11, 2 }
   0x8   : > { %p348_p5 = scmp.lt.s32.totalorder (!%p299_p3), %s1490_s28, 1  ;;  %p350_p6 = scmp.lt.s32.totalorder (!%p299_p3), %s1486_s27, 1 }
   0x9   : > { %s1832_s11 = smov (%p32_p4, %s1830_s11), 0  ;;  %302 = sbr.rel (%p299_p3) target bundleno = 696 (0x2b8), region = 52 }
   0xa   : > { %s1363_s23 = sshll.u32 (!%p299_p3), %s1486_s27, 2  ;;  %s1510_s12 = smov (!%p299_p3), 48  }
   0xb   : > { %p359_p7 = scmp.lt.s32.totalorder (!%p299_p3), %s1363_s23, 7  ;;  %s1511_s13 = smov (!%p299_p3), 16  }
   0xe   : > { %v1504_v0 = vmov 0   ;;  %v378_v1 = vld [vmem:[%s1819_s5] sm:$0xf]  ;;  %s1834_s28 = smov (!%p348_p5, %s1490_s28), 1  ;;  %vm384_vm0 = vcmask 64512   ;;  %s1836_s23 = smov (!%p359_p7, %s1363_s23), 7 }
   0xf   : > { %1462 = vset.pattern.permute.xlu0 %v1504_v0  ;;  %1463 = vset.pattern.permute.xlu2 %v1504_v0  ;;  %s351_s14 = scalar_select %p350_p6, %s1486_s27, 1  ;;  %v376_v2 = vld [vmem:[%s1816_s2] sm:$0xf]  ;;  %vm414_vm1 = vcmask 1043456   ;;  %vm410_vm2 = vcmask 31744   ;;  %v1626_v18 = vld [vmem:[%s1821_s7 + $0x8] sm:$0xff] }
  0x10   : > { %381 = vperm.xlu0 %1462, %v378_v1   ;;  %s1361_s15 = sshll.u32 %s1834_s28, 1  ;;  %s1364_s24 = sshll.u32 %s1834_s28, 3  ;;  %v409_v15 = vld [vmem:[%s1817_s3] sm:$0xff]  ;;  %459 = vmatpush.msra.mxu2 %v1626_v18  ;;  %vm441_vm3 = vcmask 130048   ;;  %vm500_vm4 = vcmask 261120   ;;  %vm540_vm5 = vcmask 523520  }
  0x11   : > { %s353_s16 = sadd.s32 %s1361_s15, %s351_s14  ;;  %s1601_s25 = sadd.s32 %s1364_s24, %s1836_s23  ;;  %v1639_v27 = vld [vmem:[%s1821_s7] sm:$0xff]  ;;  %vm606_vm6 = vcmask 785920   ;;  %vm646_vm7 = vcmask 1048320  }
  0x12   : > { %s1362_s17 = sshll.u32 %s353_s16, 3  ;;  %s1365_s26 = sshll.u32 %s1601_s25, 2  ;;  %460 = vmatpush.msra.mxu2 %v1639_v27  ;;  %v1647_v29 = vld [vmem:[%s1818_s4] sm:$0xff] }
  0x13   : > { %s355_s20 = scalar_lea.vmem %s1814_s0, %s1362_s17  ;;  %s1607_s14 = scalar_lea.vmem %s1815_s1, %s1365_s26  ;;  %v438_v41 = vld [vmem:[%s1820_s6] sm:$0xff] }
  0x14   : > { %v377_v3 = vld [vmem:[%s355_s20] sm:$0xff]  ;;  %s1505_s27 = smov 96   ;;  %s1506_s28 = smov 64   ;;  %v906_v21 = vld [vmem:[%s1607_s14 + $0x8] sm:$0xf] }
  0x15   : > { %403 = vmatpush.msra.mxu0 %v377_v3  ;;  %v503_v4 = vld [vmem:[%s1607_s14] sm:$0xf]  ;;  %v706_v9 = vld [vmem:[%s1607_s14 + $0x4] sm:$0xf]  ;;  %s1507_s15 = smov 32   ;;  %s1508_s24 = smov 112  }
  0x16   : > { %1369 = vmatmul.msk.f32.vlgmr.msra.gmra.mxu0 %vm384_vm0, %v376_v2  ;;  %505 = vst [vmem:[#allocation1] ss:$2 sm:$0xff] %v503_v4  ;;  %v569_v5 = vld [vmem:[%s1607_s14] sm:$0xf]  ;;  %v771_v16 = vld [vmem:[%s1607_s14 + $0x4] sm:$0xf] }
  0x17   : > { %v609_v7 = vld [vmem:[%s1607_s14] sm:$0xf]  ;;  %v810_v19 = vld [vmem:[%s1607_s14 + $0x4] sm:$0xf]  ;;  %v971_v23 = vld [vmem:[%s1607_s14 + $0x8] sm:$0xf] }
  0x18   : > { %v1010_v25 = vld [vmem:[%s1607_s14 + $0x8] sm:$0xf]  ;;  %v466_v28 = vld [vmem:[%s1607_s14] sm:$0xf]  ;;  %v1106_v32 = vld [vmem:[%s1607_s14 + $0xc] sm:$0xf] }
  0x19   : > { %1373 = vmatpush.msk.msra.mxu3 %vm414_vm1, %v466_v28  ;;  %v1171_v34 = vld [vmem:[%s1607_s14 + $0xc] sm:$0xf]  ;;  %s1509_s26 = smov 80   ;;  %v675_v45 = vld [vmem:[%s1607_s14 + $0x4] sm:$0xf]  ;;  %s1368_s18 = sshll.u32 %s1601_s25, 3 }
  0x1a   : > { %1374 = vmatmul.msk.f32.vlgmr.msra.gmra.mxu3 %vm410_vm2, %v1647_v29  ;;  %v1210_v35 = vld [vmem:[%s1607_s14 + $0xc] sm:$0xf]  ;;  %v875_v48 = vld [vmem:[%s1607_s14 + $0x8] sm:$0xf]  ;;  %s1725_s25 = scalar_lea.vmem %s1822_s8, %s1368_s18 }
  0x1b   : > { %v1075_v58 = vld [vmem:[%s1607_s14 + $0xc] sm:$0xf] }
  0x1d   : > { %v506_v6 = vld.sshfl [vmem:[#allocation1] sm:$0xff pattern:$0x75316420] }
  0x1e   : > { %507 = vrot.lane.b32.xlu0 %v506_v6, %s1505_s27  ;;  %571 = vst [vmem:[#allocation1] ss:$2 sm:$0xff] %v569_v5 }
  0x25   : > { %v572_v8 = vld.sshfl [vmem:[#allocation1] sm:$0xff pattern:$0x75316420] }
  0x26   : > { %573 = vrot.lane.b32.xlu1 %v572_v8, %s1506_s28  ;;  %611 = vst [vmem:[#allocation1] ss:$2 sm:$0xff] %v609_v7 }
  0x2d   : > { %v612_v11 = vld.sshfl [vmem:[#allocation1] sm:$0xff pattern:$0x75316420] }
  0x2e   : > { %708 = vst [vmem:[#allocation1] ss:$2 sm:$0xff] %v706_v9  ;;  %613 = vrot.lane.b32.xlu2 %v612_v11, %s1507_s15 }
  0x35   : > { %v709_v17 = vld.sshfl [vmem:[#allocation1] sm:$0xff pattern:$0x75316420] }
  0x36   : > { %710 = vrot.lane.b32.xlu0 %v709_v17, %s1505_s27  ;;  %773 = vst [vmem:[#allocation1] ss:$2 sm:$0xff] %v771_v16 }
  0x3d   : > { %v774_v20 = vld.sshfl [vmem:[#allocation1] sm:$0xff pattern:$0x75316420] }
  0x3e   : > { %812 = vst [vmem:[#allocation1] ss:$2 sm:$0xff] %v810_v19 }
  0x45   : > { %v813_v22 = vld.sshfl [vmem:[#allocation1] sm:$0xff pattern:$0x75316420] }
  0x46   : > { %814 = vrot.lane.b32.xlu0 %v813_v22, %s1507_s15  ;;  %908 = vst [vmem:[#allocation1] ss:$2 sm:$0xff] %v906_v21 }
  0x4d   : > { %v909_v24 = vld.sshfl [vmem:[#allocation1] sm:$0xff pattern:$0x75316420] }
  0x4e   : > { %973 = vst [vmem:[#allocation1] ss:$2 sm:$0xff] %v971_v23 }
  0x55   : > { %v974_v26 = vld.sshfl [vmem:[#allocation1] sm:$0xff pattern:$0x75316420] }
  0x56   : > { %975 = vrot.lane.b32.xlu0 %v974_v26, %s1506_s28  ;;  %1012 = vst [vmem:[#allocation1] ss:$2 sm:$0xff] %v1010_v25 }
  0x5d   : > { %v1013_v31 = vld.sshfl [vmem:[#allocation1] sm:$0xff pattern:$0x75316420] }
  0x5e   : > { %1108 = vst [vmem:[#allocation1] ss:$2 sm:$0xff] %v1106_v32 }
  0x65   : > { %v1109_v33 = vld.sshfl [vmem:[#allocation1] sm:$0xff pattern:$0x75316420] }
  0x66   : > { %1173 = vst [vmem:[#allocation1] ss:$2 sm:$0xff] %v1171_v34 }
  0x6d   : > { %v1174_v37 = vld.sshfl [vmem:[#allocation1] sm:$0xff pattern:$0x75316420] }
  0x6e   : > { %1212 = vst [vmem:[#allocation1] ss:$2 sm:$0xff] %v1210_v35 }
  0x75   : > { %v1213_v42 = vld.sshfl [vmem:[#allocation1] sm:$0xff pattern:$0x75316420] }
  0x82   : > { %v382_v10 = vpop.permute.xlu0 %381 }
  0x88   : > { %v614_v39 = vpop.permute.xlu2 %613 }
  0x89   : > { %1380 = vmatpush.msk.msrb.mxu2 %vm414_vm1, %v614_v39 }
  0x90   : > { %v508_v30 = vpop.permute.xlu0 %507 }
  0x91   : > { %1375 = vmatpush.msk.msrb.mxu0 %vm414_vm1, %v508_v30 }
  0x92   : > { %1376 = vmatmul.msk.f32.vlgmr.msrb.gmra.mxu0 %vm410_vm2, %v1647_v29 }
  0x93   : > { %v405_v12 = vpop.f32.mrf.mxu0  ;;  %668 = vmatpush.msra.mxu0 %v1626_v18 }
  0x94   : > { %v406_v13 = vadd.f32 %v405_v12, %v382_v10 }
  0x95   : > { %669 = vmatpush.msra.mxu0 %v1639_v27 }
  0x96   : > { %v408_v14 = vmax.f32 %v406_v13, 0.0 }
  0x98   : > { %1370 = vmatpush.msk.msra.mxu1 %vm414_vm1, %v408_v14  ;;  %v574_v38 = vpop.permute.xlu1 %573 }
  0x99   : > { %1371 = vmatmul.msk.f32.vlgmr.msra.gmra.mxu1 %vm410_vm2, %v409_v15  ;;  %1378 = vmatpush.msk.msrb.mxu3 %vm414_vm1, %v574_v38 }
  0x9a   : > { %562 = vmatpush.msrb.mxu1 %v1626_v18  ;;  %1379 = vmatmul.msk.f32.vlgmr.msrb.gmra.mxu3 %vm410_vm2, %v1647_v29 }
  0x9c   : > { %563 = vmatpush.msrb.mxu1 %v1639_v27 }
  0x9d   : > { %v490_v56 = vpop.f32.mrf.mxu3 }
  0x9e   : > { %1383 = vmatpush.msk.msra.mxu1 %vm414_vm1, %v675_v45 }
  0xa8   : > { %v711_v40 = vpop.permute.xlu0 %710 }
  0xa9   : > { %1385 = vmatpush.msk.msra.mxu3 %vm414_vm1, %v711_v40 }
  0xaa   : > { %1386 = vmatmul.msk.f32.vlgmr.msra.gmra.mxu3 %vm410_vm2, %v1647_v29 }
  0xab   : > { %868 = vmatpush.msrb.mxu3 %v1626_v18 }
  0xad   : > { %869 = vmatpush.msrb.mxu3 %v1639_v27 }
  0xb8   : > { %v815_v43 = vpop.permute.xlu0 %814 }
  0xc8   : > { %v976_v44 = vpop.permute.xlu0 %975 }
  0xc9   : > { %1398 = vmatpush.msk.msra.mxu3 %vm414_vm1, %v976_v44 }
 0x10f   : > { %v531_v57 = vpop.f32.mrf.mxu0 }
 0x116   : > { %v435_v36 = vpop.f32.mrf.mxu1 }
 0x117   : > { %1050 = vrot.lane.b32.xlu0 %v435_v36, %s1507_s15  ;;  %650 = vrot.lane.b32.xlu2 %v435_v36, %s1505_s27 }
 0x118   : > { %544 = vrot.lane.b32.xlu1 %v435_v36, %s1508_s24  ;;  %1372 = vmatmul.msk.f32.vlgmr.msra.gmra.mxu2 %vm441_vm3, %v435_v36 }
 0x119   : > { %764 = vmatpush.msra.mxu2 %v1626_v18 }
 0x11b   : > { %765 = vmatpush.msra.mxu2 %v1639_v27 }
 0x11d   : > { %v597_v5 = vpop.f32.mrf.mxu3 }
 0x11f   : > { %775 = vrot.lane.b32.xlu2 %v774_v20, %s1506_s28  ;;  %1175 = vrot.lane.b32.xlu0 %v1174_v37, %s1506_s28 }
 0x120   : > { %746 = vrot.lane.b32.xlu1 %v435_v36, %s1509_s26  ;;  %1381 = vmatmul.msk.f32.vlgmr.msrb.gmra.mxu2 %vm410_vm2, %v1647_v29 }
 0x121   : > { %1393 = vmatpush.msk.msrb.mxu2 %vm414_vm1, %v875_v48 }
 0x127   : > { %910 = vrot.lane.b32.xlu2 %v909_v24, %s1505_s27 }
 0x128   : > { %850 = vrot.lane.b32.xlu1 %v435_v36, %s1506_s28 }
 0x12d   : > { %v734_v6 = vpop.f32.mrf.mxu3 }
 0x12f   : > { %1014 = vrot.lane.b32.xlu2 %v1013_v31, %s1507_s15 }
 0x130   : > { %946 = vrot.lane.b32.xlu1 %v435_v36, %s1510_s12 }
 0x137   : > { %1146 = vrot.lane.b32.xlu2 %v435_v36, %s1511_s13 }
 0x138   : > { %1110 = vrot.lane.b32.xlu1 %v1109_v33, %s1505_s27 }
 0x13f   : > { %496 = vperm.xlu2 %1463, %v438_v41  }
 0x140   : > { %1214 = vrot.lane.b32.xlu1 %v1213_v42, %s1507_s15 }
 0x171   : > { %v651_v46 = vpop.permute.xlu2 %650 }
 0x172   : > { %1382 = vmatmul.msk.f32.vlgmr.msra.gmra.mxu0 %vm441_vm3, %v651_v46 }
 0x179   : > { %v776_v47 = vpop.permute.xlu2 %775 }
 0x17a   : > { %1388 = vmatpush.msk.msrb.mxu0 %vm414_vm1, %v776_v47 }
 0x17b   : > { %1389 = vmatmul.msk.f32.vlgmr.msrb.gmra.mxu0 %vm410_vm2, %v1647_v29 }
 0x181   : > { %v911_v49 = vpop.permute.xlu2 %910 }
 0x182   : > { %1395 = vmatpush.msk.msra.mxu0 %vm414_vm1, %v911_v49 }
 0x183   : > { %1396 = vmatmul.msk.f32.vlgmr.msra.gmra.mxu0 %vm410_vm2, %v1647_v29 }
 0x184   : > { %1068 = vmatpush.msrb.mxu0 %v1626_v18 }
 0x186   : > { %1069 = vmatpush.msrb.mxu0 %v1639_v27 }
 0x189   : > { %v1051_v50 = vpop.permute.xlu0 %1050  ;;  %v1015_v51 = vpop.permute.xlu2 %1014 }
 0x18a   : > { %v545_v52 = vpop.permute.xlu1 %544 }
 0x18b   : > { %1377 = vmatmul.msk.f32.vlgmr.msrb.gmra.mxu1 %vm441_vm3, %v545_v52  ;;  %1402 = vmatmul.msk.f32.vlgmr.msrb.gmra.mxu0 %vm441_vm3, %v1051_v50 }
 0x18c   : > { %1390 = vmatpush.msk.msrb.mxu1 %vm414_vm1, %v815_v43 }
 0x191   : > { %v1176_v53 = vpop.permute.xlu0 %1175  ;;  %v1147_v55 = vpop.permute.xlu2 %1146 }
 0x192   : > { %v747_v54 = vpop.permute.xlu1 %746  ;;  %1408 = vmatpush.msk.msra.mxu0 %vm414_vm1, %v1176_v53 }
 0x193   : > { %1384 = vmatmul.msk.f32.vlgmr.msra.gmra.mxu1 %vm410_vm2, %v1647_v29  ;;  %1387 = vmatmul.msk.f32.vlgmr.msra.gmra.mxu2 %vm441_vm3, %v747_v54 }
 0x194   : > { %964 = vmatpush.msra.mxu1 %v1626_v18  ;;  %1400 = vmatpush.msk.msra.mxu2 %vm414_vm1, %v1015_v51 }
 0x195   : > { %1409 = vmatmul.msk.f32.vlgmr.msra.gmra.mxu0 %vm410_vm2, %v1647_v29 }
 0x196   : > { %965 = vmatpush.msra.mxu1 %v1639_v27 }
 0x199   : > { %v1717_v61 = vpop.permute.xlu2 %496 }
 0x19a   : > { %v851_v59 = vpop.permute.xlu1 %850 }
 0x19b   : > { %v462_v60 = vpop.f32.mrf.mxu2  ;;  %1391 = vmatmul.msk.f32.vlgmr.msrb.gmra.mxu1 %vm410_vm2, %v1647_v29  ;;  %1392 = vmatmul.msk.f32.vlgmr.msrb.gmra.mxu3 %vm441_vm3, %v851_v59 }
 0x19c   : > { %v493_v62 = vadd.f32 %v490_v56, %v462_v60  ;;  %v534_v63 = vadd.f32 %v531_v57, %v462_v60  ;;  %1394 = vmatmul.msk.f32.vlgmr.msrb.gmra.mxu2 %vm410_vm2, %v1647_v29  ;;  %1403 = vmatpush.msk.msrb.mxu1 %vm414_vm1, %v1075_v58 }
 0x19d   : > { %1164 = vmatpush.msrb.mxu2 %v1626_v18 }
 0x19e   : > { %v535_v0 = vadd.f32 %v534_v63, %v1717_v61  ;;  %v499_v1 = vadd.f32 %v1717_v61, %v493_v62 }
 0x19f   : > { %1165 = vmatpush.msrb.mxu2 %v1639_v27 }
 0x1a0   : > { %537 = vrot.lane.b32.xlu0 %v535_v0, %s1507_s15  ;;  %501 = vst.msk [vmem:[%s1725_s25] sm:$0xff] %vm500_vm4, %v499_v1 }
 0x1a2   : > { %v947_v2 = vpop.permute.xlu1 %946 }
 0x1a3   : > { %1397 = vmatmul.msk.f32.vlgmr.msra.gmra.mxu1 %vm441_vm3, %v947_v2  ;;  %1399 = vmatmul.msk.f32.vlgmr.msra.gmra.mxu3 %vm410_vm2, %v1647_v29  ;;  %v637_v10 = vpop.f32.mrf.mxu2 }
 0x1a4   : > { %1401 = vmatmul.msk.f32.vlgmr.msra.gmra.mxu2 %vm410_vm2, %v1647_v29 }
 0x1aa   : > { %v1111_v3 = vpop.permute.xlu1 %1110 }
 0x1ab   : > { %1404 = vmatmul.msk.f32.vlgmr.msrb.gmra.mxu1 %vm410_vm2, %v1647_v29  ;;  %1405 = vmatpush.msk.msrb.mxu3 %vm414_vm1, %v1111_v3 }
 0x1ac   : > { %1407 = vmatmul.msk.f32.vlgmr.msrb.gmra.mxu2 %vm441_vm3, %v1147_v55  ;;  %1406 = vmatmul.msk.f32.vlgmr.msrb.gmra.mxu3 %vm410_vm2, %v1647_v29 }
 0x1b2   : > { %v1215_v4 = vpop.permute.xlu1 %1214 }
 0x1b3   : > { %1410 = vmatpush.msk.msra.mxu1 %vm414_vm1, %v1215_v4 }
 0x1b4   : > { %1411 = vmatmul.msk.f32.vlgmr.msra.gmra.mxu1 %vm410_vm2, %v1647_v29 }
 0x1ef   : > { %v671_v7 = vpop.f32.mrf.mxu0 }
 0x1f0   : > { %v737_v8 = vadd.f32 %v734_v6, %v671_v7 }
 0x1f2   : > { %v738_v9 = vadd.f32 %v737_v8, %v1717_v61 }
 0x1f4   : > { %740 = vrot.lane.b32.xlu1 %v738_v9, %s1507_s15 }
 0x1f8   : > { %v799_v17 = vpop.f32.mrf.mxu0 }
 0x200   : > { %v934_v25 = vpop.f32.mrf.mxu0 }
 0x208   : > { %v565_v11 = vpop.f32.mrf.mxu1  ;;  %v1071_v33 = vpop.f32.mrf.mxu0 }
 0x209   : > { %v600_v12 = vadd.f32 %v597_v5, %v565_v11  ;;  %v640_v13 = vadd.f32 %v637_v10, %v565_v11 }
 0x20b   : > { %v601_v14 = vadd.f32 %v600_v12, %v1717_v61  ;;  %v641_v15 = vadd.f32 %v640_v13, %v1717_v61 }
 0x20d   : > { %603 = vrot.lane.b32.xlu1 %v601_v14, %s1506_s28  ;;  %643 = vrot.lane.b32.xlu2 %v641_v15, %s1505_s27 }
 0x210   : > { %v699_v16 = vpop.f32.mrf.mxu1 }
 0x211   : > { %v702_v18 = vadd.f32 %v699_v16, %v671_v7 }
 0x212   : > { %v538_v19 = vpop.permute.xlu0 %537  ;;  %v1199_v39 = vpop.f32.mrf.mxu0 }
 0x213   : > { %v703_v20 = vadd.f32 %v702_v18, %v1717_v61  ;;  %541 = vst.msk [vmem:[%s1725_s25] sm:$0xff] %vm540_vm5, %v538_v19 }
 0x215   : > { %704 = vst.msk [vmem:[%s1725_s25 + $0x8] sm:$0xff] %vm500_vm4, %v703_v20 }
 0x216   : > { %v767_v21 = vpop.f32.mrf.mxu2 }
 0x217   : > { %v802_v22 = vadd.f32 %v799_v17, %v767_v21 }
 0x218   : > { %v838_v23 = vpop.f32.mrf.mxu1 }
 0x219   : > { %v803_v24 = vadd.f32 %v802_v22, %v1717_v61  ;;  %v841_v53 = vadd.f32 %v838_v23, %v767_v21 }
 0x21b   : > { %805 = vrot.lane.b32.xlu2 %v803_v24, %s1506_s28  ;;  %v842_v54 = vadd.f32 %v841_v53, %v1717_v61 }
 0x21e   : > { %v871_v26 = vpop.f32.mrf.mxu3 }
 0x21f   : > { %v937_v27 = vadd.f32 %v934_v25, %v871_v26  ;;  %v899_v28 = vpop.f32.mrf.mxu2 }
 0x220   : > { %v902_v29 = vadd.f32 %v899_v28, %v871_v26  ;;  %v967_v30 = vpop.f32.mrf.mxu1 }
 0x221   : > { %v938_v31 = vadd.f32 %v937_v27, %v1717_v61 }
 0x222   : > { %v903_v32 = vadd.f32 %v902_v29, %v1717_v61 }
 0x223   : > { %940 = vrot.lane.b32.xlu2 %v938_v31, %s1507_s15 }
 0x224   : > { %904 = vst.msk [vmem:[%s1725_s25 + $0x10] sm:$0xff] %vm500_vm4, %v903_v32 }
 0x226   : > { %v999_v34 = vpop.f32.mrf.mxu3 }
 0x227   : > { %v1038_v35 = vpop.f32.mrf.mxu2  ;;  %v1002_v49 = vadd.f32 %v999_v34, %v967_v30 }
 0x228   : > { %v1099_v36 = vpop.f32.mrf.mxu1  ;;  %v1041_v50 = vadd.f32 %v1038_v35, %v967_v30 }
 0x229   : > { %v1102_v37 = vadd.f32 %v1099_v36, %v1071_v33  ;;  %v1003_v51 = vadd.f32 %v1002_v49, %v1717_v61 }
 0x22a   : > { %v1042_v52 = vadd.f32 %v1041_v50, %v1717_v61 }
 0x22b   : > { %v1103_v38 = vadd.f32 %v1102_v37, %v1717_v61 }
 0x22d   : > { %1104 = vst.msk [vmem:[%s1725_s25 + $0x18] sm:$0xff] %vm500_vm4, %v1103_v38 }
 0x22f   : > { %v1167_v40 = vpop.f32.mrf.mxu2  ;;  %v1134_v41 = vpop.f32.mrf.mxu3 }
 0x230   : > { %v1202_v42 = vadd.f32 %v1199_v39, %v1167_v40  ;;  %v1137_v43 = vadd.f32 %v1134_v41, %v1071_v33 }
 0x231   : > { %v1238_v44 = vpop.f32.mrf.mxu1 }
 0x232   : > { %v1203_v45 = vadd.f32 %v1202_v42, %v1717_v61  ;;  %v1138_v46 = vadd.f32 %v1137_v43, %v1717_v61  ;;  %v1241_v47 = vadd.f32 %v1238_v44, %v1167_v40 }
 0x234   : > { %v1242_v48 = vadd.f32 %v1241_v47, %v1717_v61  ;;  %1205 = vrot.lane.b32.xlu1 %v1203_v45, %s1506_s28  ;;  %1140 = vrot.lane.b32.xlu0 %v1138_v46, %s1507_s15 }
 0x236   : > { %1244 = vrot.lane.b32.xlu2 %v1242_v48, %s1505_s27 }
 0x23c   : > { %1044 = vrot.lane.b32.xlu1 %v1042_v52, %s1505_s27  ;;  %1005 = vrot.lane.b32.xlu0 %v1003_v51, %s1506_s28 }
 0x244   : > { %844 = vrot.lane.b32.xlu0 %v842_v54, %s1505_s27 }
 0x266   : > { %v741_v55 = vpop.permute.xlu1 %740 }
 0x267   : > { %743 = vst.msk [vmem:[%s1725_s25 + $0x8] sm:$0xff] %vm540_vm5, %v741_v55  ;;  %v644_v56 = vpop.permute.xlu2 %643 }
 0x275   : > { %v806_v57 = vpop.permute.xlu2 %805 }
 0x276   : > { %808 = vst.msk [vmem:[%s1725_s25 + $0x8] sm:$0xff] %vm606_vm6, %v806_v57 }
 0x27d   : > { %v941_v58 = vpop.permute.xlu2 %940 }
 0x27e   : > { %943 = vst.msk [vmem:[%s1725_s25 + $0x10] sm:$0xff] %vm540_vm5, %v941_v58 }
 0x27f   : > { %v604_v59 = vpop.permute.xlu1 %603 }
 0x280   : > { %607 = vst.msk [vmem:[%s1725_s25] sm:$0xff] %vm606_vm6, %v604_v59 }
 0x281   : > { %647 = vst.msk [vmem:[%s1725_s25] sm:$0xff] %vm646_vm7, %v644_v56 }
 0x290   : > { %v1245_v62 = vpop.permute.xlu2 %1244 }
 0x2a6   : > { %v1206_v60 = vpop.permute.xlu1 %1205  ;;  %v1141_v61 = vpop.permute.xlu0 %1140 }
 0x2a7   : > { %1143 = vst.msk [vmem:[%s1725_s25 + $0x18] sm:$0xff] %vm540_vm5, %v1141_v61 }
 0x2a8   : > { %1208 = vst.msk [vmem:[%s1725_s25 + $0x18] sm:$0xff] %vm606_vm6, %v1206_v60 }
 0x2a9   : > { %1247 = vst.msk [vmem:[%s1725_s25 + $0x18] sm:$0xff] %vm646_vm7, %v1245_v62 }
 0x2ae   : > { %v1006_v63 = vpop.permute.xlu0 %1005  ;;  %v1045_v0 = vpop.permute.xlu1 %1044 }
 0x2af   : > { %1008 = vst.msk [vmem:[%s1725_s25 + $0x10] sm:$0xff] %vm606_vm6, %v1006_v63 }
 0x2b0   : > { %1047 = vst.msk [vmem:[%s1725_s25 + $0x10] sm:$0xff] %vm646_vm7, %v1045_v0 }
 0x2b6   : > { %v845_v1 = vpop.permute.xlu0 %844 }
 0x2b7   : > { %847 = vst.msk [vmem:[%s1725_s25 + $0x8] sm:$0xff] %vm646_vm7, %v845_v1 }
 0x2b8 PF: > { %s18_s9 = sadd.s32 1, %s1502_s9   ;;  %s1823_s27 = smov %s1494_s29 }
 0x2b9   : > { %p15_p8 = scmp.ge.s32.totalorder %s18_s9, 6   ;;  %s1824_s28 = smov %s1498_s30 }
 0x2ba   : > { %s1825_s29 = smov %s1828_s10  ;;  %s1826_s30 = smov %s1832_s11 }
 0x2bb   :  { %17 = sbr.rel (!%p15_p8) target bundleno = 3 (0x3), region = 85 }

</bundles_post_ra>
